<compile_context>
chip_gen: v7x
topology: tpu7x:2x2x1
jax: 0.10.0
libtpu: 0.0.40
codegen_flags: <defaults>
</compile_context>

<pallas_src>
import functools

import jax
import jax.numpy as jnp
from jax.experimental import pallas as pl
from jax.experimental.pallas import tpu as pltpu


def _round_up(x: int, m: int) -> int:
    return ((x + m - 1) // m) * m


def _mlp_kernel(x_ref, w1_ref, b1_ref, w2_ref, b2_ref, o_ref):
    # Fused 2-layer MLP on one (packed) batch tile. All operands fp32.
    x = x_ref[...]
    h = jnp.dot(x, w1_ref[...], preferred_element_type=jnp.float32)
    h = jnp.maximum(h + b1_ref[...], 0.0)
    o = jnp.dot(h, w2_ref[...], preferred_element_type=jnp.float32)
    o = jnp.maximum(o + b2_ref[...], 0.0)
    o_ref[...] = o.astype(o_ref.dtype)


@functools.partial(jax.jit, static_argnames=("batch_tile",))
def quality_encoder_pallas(x, w1, b1, w2, b2, *, batch_tile: int = 4096):
    """x: [B, 3] float32 -> [B, H] float32.

    Weights are [in_features, out_features] (transposed from PyTorch), biases [H].
    """
    B, F = x.shape
    H = w1.shape[1]
    b1 = b1.reshape(1, H)
    b2 = b2.reshape(1, H)

    # Pack r rows per 128-lane output row when H divides 128 (H=64 -> r=2).
    r = (128 // H) if (H < 128 and 128 % H == 0) else 1
    # Pad the tiny K=3 input features to a full sublane of 8.
    F_pad = max(F, 8)

    # Batch tile: multiple of 8*r so packed blocks satisfy the (8, 128) rule.
    quantum = 8 * r
    tb = min(batch_tile, _round_up(B, quantum))
    tb = _round_up(tb, quantum)
    grid_b = pl.cdiv(B, tb)
    B_pad = grid_b * tb

    # ---- wrapper-side layout plumbing (cheap XLA ops, no kernel relayouts) ----
    x_p = jnp.zeros((B_pad, F_pad), x.dtype).at[:B, :F].set(x)
    w1_p = jnp.zeros((F_pad, H), w1.dtype).at[:F, :].set(w1)

    if r > 1:
        eye_r = jnp.eye(r, dtype=w1.dtype)
        w1_k = jnp.kron(eye_r, w1_p)          # (F_pad*r, H*r) block-diagonal
        w2_k = jnp.kron(eye_r, w2)            # (H*r,   H*r) block-diagonal
        b1_k = jnp.tile(b1, (1, r))           # (1, H*r)
        b2_k = jnp.tile(b2, (1, r))
    else:
        w1_k, w2_k, b1_k, b2_k = w1_p, w2, b1, b2

    Kp = F_pad * r                            # packed input width
    Ho = H * r                                # packed output width (lane-dense)
    Rb = B_pad // r                           # packed rows
    tr = tb // r                              # packed rows per tile

    x_pk = x_p.reshape(Rb, Kp)                # row i = [x[r*i], ..., x[r*i+r-1]]

    out_packed = pl.pallas_call(
        _mlp_kernel,
        out_shape=jax.ShapeDtypeStruct((Rb, Ho), x.dtype),
        grid=(grid_b,),
        in_specs=[
            pl.BlockSpec((tr, Kp), lambda i: (i, 0)),   # packed activations
            pl.BlockSpec((Kp, Ho), lambda i: (0, 0)),   # W1 (block-diag, whole)
            pl.BlockSpec((1, Ho), lambda i: (0, 0)),    # b1
            pl.BlockSpec((Ho, Ho), lambda i: (0, 0)),   # W2 (block-diag, whole)
            pl.BlockSpec((1, Ho), lambda i: (0, 0)),    # b2
        ],
        out_specs=pl.BlockSpec((tr, Ho), lambda i: (i, 0)),
        compiler_params=pltpu.CompilerParams(
            dimension_semantics=("parallel",)),
    )(x_pk, w1_k, b1_k, w2_k, b2_k)

    # Unpack [Rb, H*r] -> [B_pad, H] and drop batch padding.
    return out_packed.reshape(B_pad, H)[:B]


def init_params(key, hidden_dim=64, in_dim=3, dtype=jnp.float32):
    """Deterministic init mimicking nn.Linear's U(-1/sqrt(fan_in), 1/sqrt(fan_in))."""
    k1, k2, k3, k4 = jax.random.split(key, 4)
    lim1 = 1.0 / jnp.sqrt(in_dim)
    lim2 = 1.0 / jnp.sqrt(hidden_dim)
    w1 = jax.random.uniform(k1, (in_dim, hidden_dim), dtype, -lim1, lim1)
    b1 = jax.random.uniform(k2, (hidden_dim,), dtype, -lim1, lim1)
    w2 = jax.random.uniform(k3, (hidden_dim, hidden_dim), dtype, -lim2, lim2)
    b2 = jax.random.uniform(k4, (hidden_dim,), dtype, -lim2, lim2)
    return w1, b1, w2, b2


def quality_encoder_ref(x, w1, b1, w2, b2):
    h = jnp.maximum(x @ w1 + b1[None, :], 0.0)
    return jnp.maximum(h @ w2 + b2[None, :], 0.0)


if __name__ == "__main__":
    key = jax.random.PRNGKey(0)
    kx, kx2, kp = jax.random.split(key, 3)

    HIDDEN = 64
    w1, b1, w2, b2 = init_params(kp, hidden_dim=HIDDEN)

    # Small shape consistent with the module: quality scores [B, 3] in [0, 1].
    B = 8
    x = jax.random.uniform(kx, (B, 3), jnp.float32)
    out = quality_encoder_pallas(x, w1, b1, w2, b2)
    out = jax.block_until_ready(out)
    ref = quality_encoder_ref(x, w1, b1, w2, b2)
    assert out.shape == (B, HIDDEN), out.shape
    assert jnp.allclose(out, ref, atol=1e-5, rtol=1e-5), "mismatch vs reference"

    # Extra check: batch not a multiple of the tile quantum (exercises padding/packing).
    B2 = 37
    x2 = jax.random.uniform(kx2, (B2, 3), jnp.float32)
    out2 = jax.block_until_ready(quality_encoder_pallas(x2, w1, b1, w2, b2))
    ref2 = quality_encoder_ref(x2, w1, b1, w2, b2)
    assert out2.shape == (B2, HIDDEN), out2.shape
    assert jnp.allclose(out2, ref2, atol=1e-5, rtol=1e-5), "mismatch vs reference (odd B)"

    print("KERNEL_OK")
</pallas_src>

<mosaic_0001>
module attributes {stable_mosaic.version = 11 : i64} {
  func.func @_mlp_kernel(%arg0: i32, %arg1: memref<8x16xf32, #tpu.memory_space<vmem>>, %arg2: memref<16x128xf32, #tpu.memory_space<vmem>>, %arg3: memref<1x128xf32, #tpu.memory_space<vmem>>, %arg4: memref<128x128xf32, #tpu.memory_space<vmem>>, %arg5: memref<1x128xf32, #tpu.memory_space<vmem>>, %arg6: memref<8x128xf32, #tpu.memory_space<vmem>>) attributes {dimension_semantics = [#tpu.dimension_semantics<parallel>], iteration_bounds = array<i64: 1>, scalar_prefetch = 0 : i64, scratch_operands = 0 : i64, tpu.core_type = #tpu.core_type<tc>, window_params = [{transform_indices = @transform_0, window_bounds = array<i64: 8, 16>}, {pipeline_mode = #tpu.pipeline_mode<synchronous>, transform_indices = @transform_1, window_bounds = array<i64: 16, 128>}, {pipeline_mode = #tpu.pipeline_mode<synchronous>, transform_indices = @transform_2, window_bounds = array<i64: 1, 128>}, {pipeline_mode = #tpu.pipeline_mode<synchronous>, transform_indices = @transform_3, window_bounds = array<i64: 128, 128>}, {pipeline_mode = #tpu.pipeline_mode<synchronous>, transform_indices = @transform_4, window_bounds = array<i64: 1, 128>}, {transform_indices = @transform_5, window_bounds = array<i64: 8, 128>}]} {
    %c0 = arith.constant 0 : index
    %c0_0 = arith.constant 0 : index
    %0 = vector.load %arg1[%c0, %c0_0] : memref<8x16xf32, #tpu.memory_space<vmem>>, vector<8x16xf32>
    %c0_1 = arith.constant 0 : index
    %c0_2 = arith.constant 0 : index
    %1 = vector.load %arg2[%c0_1, %c0_2] : memref<16x128xf32, #tpu.memory_space<vmem>>, vector<16x128xf32>
    %cst = arith.constant dense<0.000000e+00> : vector<8x128xf32>
    %2 = tpu.matmul %0, %1, %cst {dimension_numbers = #tpu.dot_dimension_numbers<[1], [0], [0], [1], [0, 0, 1, 1], [], []>} : vector<8x16xf32>, vector<16x128xf32>, vector<8x128xf32> -> vector<8x128xf32>
    %c0_3 = arith.constant 0 : index
    %c0_4 = arith.constant 0 : index
    %3 = vector.load %arg3[%c0_3, %c0_4] : memref<1x128xf32, #tpu.memory_space<vmem>>, vector<1x128xf32>
    %4 = vector.broadcast %3 : vector<1x128xf32> to vector<8x128xf32>
    %5 = arith.addf %2, %4 : vector<8x128xf32>
    %cst_5 = arith.constant 0.000000e+00 : f32
    %6 = vector.broadcast %cst_5 : f32 to vector<8x128xf32>
    %7 = arith.maximumf %5, %6 : vector<8x128xf32>
    %c0_6 = arith.constant 0 : index
    %c0_7 = arith.constant 0 : index
    %8 = vector.load %arg4[%c0_6, %c0_7] : memref<128x128xf32, #tpu.memory_space<vmem>>, vector<128x128xf32>
    %cst_8 = arith.constant dense<0.000000e+00> : vector<8x128xf32>
    %9 = tpu.matmul %7, %8, %cst_8 {dimension_numbers = #tpu.dot_dimension_numbers<[1], [0], [0], [1], [0, 0, 1, 1], [], []>} : vector<8x128xf32>, vector<128x128xf32>, vector<8x128xf32> -> vector<8x128xf32>
    %c0_9 = arith.constant 0 : index
    %c0_10 = arith.constant 0 : index
    %10 = vector.load %arg5[%c0_9, %c0_10] : memref<1x128xf32, #tpu.memory_space<vmem>>, vector<1x128xf32>
    %11 = vector.broadcast %10 : vector<1x128xf32> to vector<8x128xf32>
    %12 = arith.addf %9, %11 : vector<8x128xf32>
    %cst_11 = arith.constant 0.000000e+00 : f32
    %13 = vector.broadcast %cst_11 : f32 to vector<8x128xf32>
    %14 = arith.maximumf %12, %13 : vector<8x128xf32>
    %c0_12 = arith.constant 0 : index
    %c0_13 = arith.constant 0 : index
    %15 = vector.load %arg6[%c0_12, %c0_13] : memref<8x128xf32, #tpu.memory_space<vmem>>, vector<8x128xf32>
    tpu.vector_store %arg6[%c0_12, %c0_13], %14 {strides = array<i32>} : memref<8x128xf32, #tpu.memory_space<vmem>>, vector<8x128xf32>,
    return
  }
  func.func @transform_0(%arg0: i32) -> (i32, i32) {
    %c0_i32 = arith.constant 0 : i32
    %c0_i32_0 = arith.constant 0 : i32
    return %arg0, %c0_i32 : i32, i32
  }
  func.func @transform_1(%arg0: i32) -> (i32, i32) {
    %c0_i32 = arith.constant 0 : i32
    %c0_i32_0 = arith.constant 0 : i32
    %c0_i32_1 = arith.constant 0 : i32
    return %c0_i32, %c0_i32_0 : i32, i32
  }
  func.func @transform_2(%arg0: i32) -> (i32, i32) {
    %c0_i32 = arith.constant 0 : i32
    %c0_i32_0 = arith.constant 0 : i32
    %c0_i32_1 = arith.constant 0 : i32
    return %c0_i32, %c0_i32_0 : i32, i32
  }
  func.func @transform_3(%arg0: i32) -> (i32, i32) {
    %c0_i32 = arith.constant 0 : i32
    %c0_i32_0 = arith.constant 0 : i32
    %c0_i32_1 = arith.constant 0 : i32
    return %c0_i32, %c0_i32_0 : i32, i32
  }
  func.func @transform_4(%arg0: i32) -> (i32, i32) {
    %c0_i32 = arith.constant 0 : i32
    %c0_i32_0 = arith.constant 0 : i32
    %c0_i32_1 = arith.constant 0 : i32
    return %c0_i32, %c0_i32_0 : i32, i32
  }
  func.func @transform_5(%arg0: i32) -> (i32, i32) {
    %c0_i32 = arith.constant 0 : i32
    %c0_i32_0 = arith.constant 0 : i32
    return %arg0, %c0_i32 : i32, i32
  }
}

</mosaic_0001>

<bundles_post_ra>
// kernel: quality_encoder_pallas.1
= control target key start
LH: loop header
LB: loop body
LE: loop exit
PB: predicated region body
PF: predicated region fallthrough
CT: control target
= control target key end

     0   :  { %v299_v0 = vmov 0.0|0.0   ;;  %vm300_vm0 = vmmov 0   ;;  %v301_v3 = vmov 0.0   ;;  %vm30_vm1 = vcmask 130048   ;;  %s398_s1 = inlined_call_operand.vmem [shape: f32[16,128], index: 1, kind: input, shape index: {}]   ;;  %s399_s3 = inlined_call_operand.vmem [shape: f32[128,128], index: 3, kind: input, shape index: {}]   ;;  %s400_s0 = inlined_call_operand.vmem [shape: f32[8,16], index: 0, kind: input, shape index: {}]   ;;  %s401_s2 = inlined_call_operand.vmem [shape: f32[1,128], index: 2, kind: input, shape index: {}]   ;;  %s402_s4 = inlined_call_operand.vmem [shape: f32[1,128], index: 4, kind: input, shape index: {}]   ;;  %s403_s5 = inlined_call_operand.vmem [shape: f32[8,128], index: 5, kind: output, shape index: {}]  }
   0x1   :  { %269 = vmatprep.subr.bf16.mxu0 %v299_v0  ;;  %v21_v1 = vld [vmem:[%s398_s1] sm:$0xff]  ;;  %v22_v2 = vld [vmem:[%s398_s1 + $0x8] sm:$0xff]  ;;  %231 = vmatprep.mubr.msk.f32.mxu0 %vm300_vm0, %v301_v3  ;;  %v107_v7 = vld [vmem:[%s399_s3 + $0x10] sm:$0xff] }
   0x2   :  { %v270_v4 = vpack.c.bf16 %v22_v2, %v21_v1  ;;  %272 = vmatprep.subr.bf16.mxu1 %v299_v0  ;;  %v105_v5 = vld [vmem:[%s399_s3] sm:$0xff]  ;;  %v106_v6 = vld [vmem:[%s399_s3 + $0x8] sm:$0xff]  ;;  %266 = vmatprep.mubr.msk.f32.mxu1 %vm300_vm0, %v301_v3  ;;  %v108_v9 = vld [vmem:[%s399_s3 + $0x18] sm:$0xff] }
   0x3   :  { %v273_v8 = vpack.c.bf16 %v106_v6, %v105_v5  ;;  %v20_v10 = vld [vmem:[%s400_s0] sm:$0xff]  ;;  %v276_v11 = vpack.c.bf16 %v108_v9, %v107_v7  ;;  %v110_v13 = vld [vmem:[%s399_s3 + $0x28] sm:$0xff]  ;;  %v111_v15 = vld [vmem:[%s399_s3 + $0x30] sm:$0xff] }
   0x4   :  { %271 = vmatpush3.bf16.msra.mxu0 %v270_v4  ;;  %v109_v12 = vld [vmem:[%s399_s3 + $0x20] sm:$0xff]  ;;  %v112_v16 = vld [vmem:[%s399_s3 + $0x38] sm:$0xff]  ;;  %v114_v19 = vld [vmem:[%s399_s3 + $0x48] sm:$0xff] }
   0x5   :  { %274 = vmatpush3.bf16.msra.mxu1 %v273_v8  ;;  %v279_v14 = vpack.c.bf16 %v110_v13, %v109_v12  ;;  %v282_v17 = vpack.c.bf16 %v112_v16, %v111_v15  ;;  %v113_v18 = vld [vmem:[%s399_s3 + $0x40] sm:$0xff]  ;;  %v115_v21 = vld [vmem:[%s399_s3 + $0x50] sm:$0xff]  ;;  %v116_v22 = vld [vmem:[%s399_s3 + $0x58] sm:$0xff] }
   0x6   :  { %275 = vmatprep.subr.bf16.mxu1 %v299_v0  ;;  %v285_v20 = vpack.c.bf16 %v114_v19, %v113_v18  ;;  %v288_v23 = vpack.c.bf16 %v116_v22, %v115_v21  ;;  %v117_v24 = vld [vmem:[%s399_s3 + $0x60] sm:$0xff]  ;;  %v118_v25 = vld [vmem:[%s399_s3 + $0x68] sm:$0xff]  ;;  %v119_v27 = vld [vmem:[%s399_s3 + $0x70] sm:$0xff] }
   0x7   :  { %232 = vmatmul.mubr.msk.f32.vlgmr.msra.gmra.mrb[0].mxu0 %vm30_vm1, %v20_v10  ;;  %v291_v26 = vpack.c.bf16 %v118_v25, %v117_v24  ;;  %v120_v28 = vld [vmem:[%s399_s3 + $0x78] sm:$0xff]  ;;  %v204_v30 = vld [vmem:[%s401_s2] ss:$0 sm:$0xff] }
   0x8   :  { %v294_v29 = vpack.c.bf16 %v120_v28, %v119_v27  ;;  %v206_v35 = vld [vmem:[%s402_s4] ss:$0 sm:$0xff] }
   0x9   :  { %277 = vmatpush3.bf16.msra.mxu1 %v276_v11 }
   0xa   :  { %278 = vmatprep.subr.bf16.mxu1 %v299_v0 }
   0xd   :  { %280 = vmatpush3.bf16.msra.mxu1 %v279_v14 }
   0xe   :  { %281 = vmatprep.subr.bf16.mxu1 %v299_v0 }
  0x11   :  { %283 = vmatpush3.bf16.msra.mxu1 %v282_v17 }
  0x12   :  { %284 = vmatprep.subr.bf16.mxu1 %v299_v0 }
  0x15   :  { %286 = vmatpush3.bf16.msra.mxu1 %v285_v20 }
  0x16   :  { %287 = vmatprep.subr.bf16.mxu1 %v299_v0 }
  0x19   :  { %289 = vmatpush3.bf16.msra.mxu1 %v288_v23 }
  0x1a   :  { %290 = vmatprep.subr.bf16.mxu1 %v299_v0 }
  0x1d   :  { %292 = vmatpush3.bf16.msra.mxu1 %v291_v26 }
  0x1e   :  { %293 = vmatprep.subr.bf16.mxu1 %v299_v0 }
  0x21   :  { %295 = vmatpush3.bf16.msra.mxu1 %v294_v29 }
  0xda   :  { %v100_v31 = vpop.f32.mrb[0].mxu0 }
  0xdb   :  { %v101_v32 = vadd.f32 %v204_v30, %v100_v31  ;;  %v233_v33 = vpop.f32.mrb[1].mxu0 }
  0xdd   :  { %v104_v34 = vmax.f32 %v101_v32, 0.0 }
  0xdf   :  { %267 = vmatmul.mubr.f32.vlgmr.msra.gmra.mrb[0].mxu1 %v104_v34 }
 0x1b2   :  { %v194_v36 = vpop.f32.mrb[0].mxu1 }
 0x1b3   :  { %v195_v37 = vadd.f32 %v206_v35, %v194_v36  ;;  %v268_v38 = vpop.f32.mrb[1].mxu1 }
 0x1b5   :  { %v198_v39 = vmax.f32 %v195_v37, 0.0 }
 0x1b7   :  { %199 = vst [vmem:[%s403_s5] sm:$0xff] %v198_v39 }

</bundles_post_ra>
